<compile_context>
chip_gen: v5e
topology: v5e:2x2
jax: 0.10.0
libtpu: 0.0.40
codegen_flags: <defaults>
</compile_context>

<pallas_src>
import functools

import jax
import jax.numpy as jnp
from jax.experimental import pallas as pl
from jax.experimental.pallas import tpu as pltpu


def _round_up(x, m):
    return ((x + m - 1) // m) * m


def rank_loss_kernel(q_ref, p_ref, hits_ref, acc_ref, *,
                     inv_anneal, n_query, n_preds, tm, tn, approx_recip):
    i = pl.program_id(0)          # query (M) tile  -- "parallel"
    j = pl.program_id(1)          # preds (N) tile  -- "arbitrary" reduction, last

    @pl.when(j == 0)
    def _init():
        acc_ref[...] = jnp.zeros_like(acc_ref)

    # NT matmul: contract the feature dim directly (no transpose of preds).
    # Inputs stay in their native dtype (bf16 runs the MXU at native rate);
    # accumulation is f32.
    sim = jax.lax.dot_general(
        q_ref[...], p_ref[...],
        dimension_numbers=(((1,), (1,)), ((), ())),
        preferred_element_type=jnp.float32,
    )                                                        # (tm, tn) f32

    # Temperature sigmoid with the reference's clamp.  anneal is folded into
    # a single compile-time constant multiply (no per-element divide).
    x = sim * jnp.float32(inv_anneal)
    denom = 1.0 + jnp.exp(jnp.clip(-x, -50.0, 50.0))
    if approx_recip:
        sim_sg = pl.reciprocal(denom, approx=True)   # EUP vrcp, frees the VALU slot
    else:
        sim_sg = 1.0 / denom                         # exact (hard threshold downstream)

    # Zero out padded pred columns so they don't add 0.5 each to the rank.
    col = jax.lax.broadcasted_iota(jnp.int32, sim.shape, 1) + j * tn
    sim_sg = jnp.where(col < n_preds, sim_sg, 0.0)

    # Partial row-sum of the soft indicator into the resident accumulator.
    acc_ref[...] += jnp.sum(sim_sg, axis=-1, keepdims=True)

    @pl.when(j == pl.num_programs(1) - 1)
    def _finalize():
        rk = acc_ref[...] + 1.0                              # (tm, 1) ranks
        row = jax.lax.broadcasted_iota(jnp.int32, rk.shape, 0) + i * tm
        valid = row < n_query                                # mask padded query rows
        # TODO(synk): hard (non-differentiable) count, exactly as the reference.
        hit = jnp.where(valid & (rk <= jnp.float32(n_preds)), 1.0, 0.0)
        hits = jnp.sum(hit)
        # Lane-dense output block: hit count at [0, 0], zeros elsewhere.
        r = jax.lax.broadcasted_iota(jnp.int32, hits_ref.shape, 0)
        c = jax.lax.broadcasted_iota(jnp.int32, hits_ref.shape, 1)
        hits_ref[...] = jnp.where((r == 0) & (c == 0), hits, 0.0)


_VMEM_TILE_BUDGET = 24 * 1024 * 1024   # sized against v7x's 64 MiB physical VMEM


def rank_loss(query_feature, preds, anneal=0.1, *,
              tm_max=256, tn_max=1024, approx_recip=False):
    M, D = query_feature.shape
    N, D2 = preds.shape
    assert D == D2, "feature dims must match"

    itemsize = jnp.dtype(query_feature.dtype).itemsize

    # Lane-align the contraction dim (zero padding is exact for the dot product).
    # TODO(synk): D itself is not tiled; extremely large D would need a K-grid.
    Dp = _round_up(D, 128)

    # Tile sizes: as large as the VMEM budget allows (double-buffered q/p
    # tiles + the (tm, tn) f32 sim block), re-derived for v7x's smaller VMEM.
    tm = min(tm_max, _round_up(M, 8))
    tn = min(tn_max, _round_up(N, 128))

    def vmem_bytes(tm_, tn_):
        return (2 * (tm_ * Dp + tn_ * Dp) * itemsize   # double-buffered input tiles
                + tm_ * tn_ * 4                        # f32 sim block
                + tm_ * 4 + 2 * 8 * 128 * 4)           # accumulator + hits blocks

    while tn > 128 and vmem_bytes(tm, tn) > _VMEM_TILE_BUDGET:
        tn = max(128, (tn // 2) // 128 * 128)
    while tm > 8 and vmem_bytes(tm, tn) > _VMEM_TILE_BUDGET:
        tm = max(8, (tm // 2) // 8 * 8)

    Mp = _round_up(M, tm)
    Np = _round_up(N, tn)

    q = query_feature
    p = preds
    if (Mp, Dp) != (M, D):
        q = jnp.pad(q, ((0, Mp - M), (0, Dp - D)))
    if (Np, Dp) != (N, D):
        p = jnp.pad(p, ((0, Np - N), (0, Dp - D)))

    grid_m = Mp // tm
    grid_n = Np // tn

    kernel = functools.partial(
        rank_loss_kernel,
        inv_anneal=float(1.0 / anneal), n_query=M, n_preds=N,
        tm=tm, tn=tn, approx_recip=approx_recip,
    )

    hits_blocks = pl.pallas_call(
        kernel,
        out_shape=jax.ShapeDtypeStruct((grid_m * 8, 128), jnp.float32),
        grid_spec=pltpu.PrefetchScalarGridSpec(
            num_scalar_prefetch=0,
            grid=(grid_m, grid_n),
            in_specs=[
                pl.BlockSpec((tm, Dp), lambda i, j: (i, 0)),   # query tile
                pl.BlockSpec((tn, Dp), lambda i, j: (j, 0)),   # preds tile (streamed)
            ],
            out_specs=pl.BlockSpec((8, 128), lambda i, j: (i, 0)),
            scratch_shapes=[pltpu.VMEM((tm, 1), jnp.float32)],
        ),
        compiler_params=pltpu.CompilerParams(
            dimension_semantics=("parallel", "arbitrary"),
            vmem_limit_bytes=32 * 1024 * 1024,
        ),
    )(q, p)

    # Tiny final reduction (one hit count per M tile) + scalar loss.
    top_k_avg = jnp.sum(hits_blocks) / jnp.float32(M)
    return (1.0 - top_k_avg).astype(jnp.float32)


def rank_loss_ref(query_feature, preds, anneal=0.1):
    """Pure-JAX reference for correctness checking."""
    q = query_feature.astype(jnp.float32)
    p = preds.astype(jnp.float32)
    sim = q @ p.T
    exponent = jnp.clip(-sim / anneal, -50.0, 50.0)
    sim_sg = 1.0 / (1.0 + jnp.exp(exponent))
    rk = jnp.sum(sim_sg, axis=-1) + 1.0
    top_k_avg = jnp.mean((rk <= preds.shape[0]).astype(jnp.float32))
    return 1.0 - top_k_avg


if __name__ == "__main__":
    key = jax.random.PRNGKey(0)
    kq, kp = jax.random.split(key)

    M, N, D = 8, 8, 32  # M queries, N preds, D feature dims
    anneal = 0.1

    query_feature = jax.random.normal(kq, (M, D), dtype=jnp.float32)
    preds = jax.random.normal(kp, (N, D), dtype=jnp.float32)

    # Exact path: must match the pure-JAX reference.
    loss = rank_loss(query_feature, preds, anneal=anneal)
    jax.block_until_ready(loss)
    ref = rank_loss_ref(query_feature, preds, anneal=anneal)
    assert jnp.allclose(loss, ref, atol=1e-5, rtol=1e-5), (loss, ref)

    # EUP approx-reciprocal perf path: smoke test only (the hard rank<=N
    # threshold can flip on ~1e-4 approx error, per the review note).
    loss_approx = rank_loss(query_feature, preds, anneal=anneal, approx_recip=True)
    jax.block_until_ready(loss_approx)
    assert 0.0 <= float(loss_approx) <= 1.0

    # Native-bf16 inputs straight into the MXU (no forced f32 upcast).
    loss_bf16 = rank_loss(query_feature.astype(jnp.bfloat16),
                          preds.astype(jnp.bfloat16), anneal=anneal)
    jax.block_until_ready(loss_bf16)
    assert 0.0 <= float(loss_bf16) <= 1.0

    print("KERNEL_OK")
</pallas_src>

<mosaic_0001>
module attributes {stable_mosaic.version = 11 : i64} {
  func.func @rank_loss_kernel(%arg0: i32, %arg1: i32, %arg2: memref<8x128xf32, #tpu.memory_space<vmem>>, %arg3: memref<128x128xf32, #tpu.memory_space<vmem>>, %arg4: memref<8x128xf32, #tpu.memory_space<vmem>>, %arg5: memref<8x1xf32, #tpu.memory_space<vmem>>) attributes {dimension_semantics = [#tpu.dimension_semantics<parallel>, #tpu.dimension_semantics<arbitrary>], iteration_bounds = array<i64: 1, 1>, scalar_prefetch = 0 : i64, scratch_operands = 1 : i64, tpu.core_type = #tpu.core_type<tc>, window_params = [{transform_indices = @transform_0, window_bounds = array<i64: 8, 128>}, {transform_indices = @transform_1, window_bounds = array<i64: 128, 128>}, {transform_indices = @transform_2, window_bounds = array<i64: 8, 128>}]} {
    %c0_i32 = arith.constant 0 : i32
    %0 = arith.cmpi eq, %arg1, %c0_i32 : i32
    %1 = arith.extui %0 : i1 to i32
    %c0_i32_0 = arith.constant 0 : i32
    %2 = arith.cmpi ne, %1, %c0_i32_0 : i32
    scf.if %2 {
      %cst_18 = arith.constant 0.000000e+00 : f32
      %35 = vector.broadcast %cst_18 : f32 to vector<8x1xf32>
      %c0_19 = arith.constant 0 : index
      %c0_20 = arith.constant 0 : index
      %36 = vector.load %arg5[%c0_19, %c0_20] : memref<8x1xf32, #tpu.memory_space<vmem>>, vector<8x1xf32>
      tpu.vector_store %arg5[%c0_19, %c0_20], %35 {strides = array<i32>} : memref<8x1xf32, #tpu.memory_space<vmem>>, vector<8x1xf32>,
    } else {
    }
    %c0 = arith.constant 0 : index
    %c0_1 = arith.constant 0 : index
    %3 = vector.load %arg2[%c0, %c0_1] : memref<8x128xf32, #tpu.memory_space<vmem>>, vector<8x128xf32>
    %c0_2 = arith.constant 0 : index
    %c0_3 = arith.constant 0 : index
    %4 = vector.load %arg3[%c0_2, %c0_3] : memref<128x128xf32, #tpu.memory_space<vmem>>, vector<128x128xf32>
    %cst = arith.constant dense<0.000000e+00> : vector<8x128xf32>
    %5 = tpu.matmul %3, %4, %cst {dimension_numbers = #tpu.dot_dimension_numbers<[1], [1], [0], [0], [0, 0, 1, 0], [], []>} : vector<8x128xf32>, vector<128x128xf32>, vector<8x128xf32> -> vector<8x128xf32>
    %cst_4 = arith.constant 1.000000e+01 : f32
    %6 = vector.broadcast %cst_4 : f32 to vector<8x128xf32>
    %7 = arith.mulf %5, %6 : vector<8x128xf32>
    %cst_5 = arith.constant 0.000000e+00 : f32
    %8 = vector.broadcast %cst_5 : f32 to vector<8x128xf32>
    %9 = arith.subf %8, %7 : vector<8x128xf32>
    %cst_6 = arith.constant -5.000000e+01 : f32
    %cst_7 = arith.constant 5.000000e+01 : f32
    %10 = vector.broadcast %cst_6 : f32 to vector<8x128xf32>
    %11 = arith.maximumf %10, %9 : vector<8x128xf32>
    %12 = vector.broadcast %cst_7 : f32 to vector<8x128xf32>
    %13 = arith.minimumf %12, %11 : vector<8x128xf32>
    %14 = math.exp %13 : vector<8x128xf32>
    %cst_8 = arith.constant 1.000000e+00 : f32
    %15 = vector.broadcast %cst_8 : f32 to vector<8x128xf32>
    %16 = arith.addf %15, %14 : vector<8x128xf32>
    %cst_9 = arith.constant 1.000000e+00 : f32
    %17 = vector.broadcast %cst_9 : f32 to vector<8x128xf32>
    %18 = arith.divf %17, %16 : vector<8x128xf32>
    %19 = tpu.iota {dimensions = array<i32: 1>} : vector<8x128xi32>
    %c128_i32 = arith.constant 128 : i32
    %20 = arith.muli %arg1, %c128_i32 : i32
    %21 = vector.broadcast %20 : i32 to vector<8x128xi32>
    %22 = arith.addi %19, %21 : vector<8x128xi32>
    %c8_i32 = arith.constant 8 : i32
    %23 = vector.broadcast %c8_i32 : i32 to vector<8x128xi32>
    %24 = arith.cmpi slt, %22, %23 : vector<8x128xi32>
    %cst_10 = arith.constant 0.000000e+00 : f32
    %25 = vector.broadcast %cst_10 : f32 to vector<8x128xf32>
    %26 = arith.select %24, %18, %25 : vector<8x128xi1>, vector<8x128xf32>
    %c0_11 = arith.constant 0 : index
    %c0_12 = arith.constant 0 : index
    %27 = vector.load %arg5[%c0_11, %c0_12] : memref<8x1xf32, #tpu.memory_space<vmem>>, vector<8x1xf32>
    %cst_13 = arith.constant dense<0.000000e+00> : vector<8xf32>
    %28 = vector.multi_reduction <add>, %26, %cst_13 [1] : vector<8x128xf32> to vector<8xf32>
    %29 = vector.shape_cast %28 : vector<8xf32> to vector<8x1xf32>
    %30 = arith.addf %27, %29 : vector<8x1xf32>
    %c0_14 = arith.constant 0 : index
    %c0_15 = arith.constant 0 : index
    %31 = vector.load %arg5[%c0_14, %c0_15] : memref<8x1xf32, #tpu.memory_space<vmem>>, vector<8x1xf32>
    tpu.vector_store %arg5[%c0_14, %c0_15], %30 {strides = array<i32>} : memref<8x1xf32, #tpu.memory_space<vmem>>, vector<8x1xf32>,
    %c0_i32_16 = arith.constant 0 : i32
    %32 = arith.cmpi eq, %arg1, %c0_i32_16 : i32
    %33 = arith.extui %32 : i1 to i32
    %c0_i32_17 = arith.constant 0 : i32
    %34 = arith.cmpi ne, %33, %c0_i32_17 : i32
    scf.if %34 {
      %c0_18 = arith.constant 0 : index
      %c0_19 = arith.constant 0 : index
      %35 = vector.load %arg5[%c0_18, %c0_19] : memref<8x1xf32, #tpu.memory_space<vmem>>, vector<8x1xf32>
      %cst_20 = arith.constant 1.000000e+00 : f32
      %36 = vector.broadcast %cst_20 : f32 to vector<8x1xf32>
      %37 = arith.addf %35, %36 : vector<8x1xf32>
      %38 = tpu.iota {dimensions = array<i32: 0>} : vector<8x1xi32>
      %c8_i32_21 = arith.constant 8 : i32
      %39 = arith.muli %arg0, %c8_i32_21 : i32
      %40 = vector.broadcast %39 : i32 to vector<8x1xi32>
      %41 = arith.addi %38, %40 : vector<8x1xi32>
      %c8_i32_22 = arith.constant 8 : i32
      %42 = vector.broadcast %c8_i32_22 : i32 to vector<8x1xi32>
      %43 = arith.cmpi slt, %41, %42 : vector<8x1xi32>
      %cst_23 = arith.constant 8.000000e+00 : f32
      %44 = vector.broadcast %cst_23 : f32 to vector<8x1xf32>
      %45 = arith.cmpf ole, %37, %44 : vector<8x1xf32>
      %46 = arith.andi %43, %45 : vector<8x1xi1>
      %cst_24 = arith.constant 1.000000e+00 : f32
      %cst_25 = arith.constant 0.000000e+00 : f32
      %47 = vector.broadcast %cst_24 : f32 to vector<8x1xf32>
      %48 = vector.broadcast %cst_25 : f32 to vector<8x1xf32>
      %49 = arith.select %46, %47, %48 : vector<8x1xi1>, vector<8x1xf32>
      %50 = vector.shape_cast %49 : vector<8x1xf32> to vector<1x8x1xf32>
      %cst_26 = arith.constant dense<0.000000e+00> : vector<1xf32>
      %51 = vector.multi_reduction <add>, %50, %cst_26 [1, 2] : vector<1x8x1xf32> to vector<1xf32>
      %52 = vector.shape_cast %51 : vector<1xf32> to vector<1x1x1xf32>
      %53 = vector.extract %52[0, 0, 0] : f32 from vector<1x1x1xf32>
      %54 = tpu.iota {dimensions = array<i32: 0>} : vector<8x128xi32>
      %55 = tpu.iota {dimensions = array<i32: 1>} : vector<8x128xi32>
      %c0_i32_27 = arith.constant 0 : i32
      %56 = vector.broadcast %c0_i32_27 : i32 to vector<8x128xi32>
      %57 = arith.cmpi eq, %54, %56 : vector<8x128xi32>
      %c0_i32_28 = arith.constant 0 : i32
      %58 = vector.broadcast %c0_i32_28 : i32 to vector<8x128xi32>
      %59 = arith.cmpi eq, %55, %58 : vector<8x128xi32>
      %60 = arith.andi %57, %59 : vector<8x128xi1>
      %cst_29 = arith.constant 0.000000e+00 : f32
      %61 = vector.broadcast %53 : f32 to vector<8x128xf32>
      %62 = vector.broadcast %cst_29 : f32 to vector<8x128xf32>
      %63 = arith.select %60, %61, %62 : vector<8x128xi1>, vector<8x128xf32>
      %c0_30 = arith.constant 0 : index
      %c0_31 = arith.constant 0 : index
      %64 = vector.load %arg4[%c0_30, %c0_31] : memref<8x128xf32, #tpu.memory_space<vmem>>, vector<8x128xf32>
      tpu.vector_store %arg4[%c0_30, %c0_31], %63 {strides = array<i32>} : memref<8x128xf32, #tpu.memory_space<vmem>>, vector<8x128xf32>,
    } else {
    }
    return
  }
  func.func @transform_0(%arg0: i32, %arg1: i32) -> (i32, i32) {
    %c0_i32 = arith.constant 0 : i32
    %c0_i32_0 = arith.constant 0 : i32
    return %arg0, %c0_i32 : i32, i32
  }
  func.func @transform_1(%arg0: i32, %arg1: i32) -> (i32, i32) {
    %c0_i32 = arith.constant 0 : i32
    %c0_i32_0 = arith.constant 0 : i32
    return %arg1, %c0_i32 : i32, i32
  }
  func.func @transform_2(%arg0: i32, %arg1: i32) -> (i32, i32) {
    %c0_i32 = arith.constant 0 : i32
    %c0_i32_0 = arith.constant 0 : i32
    return %arg0, %c0_i32 : i32, i32
  }
}

</mosaic_0001>

<bundles_post_ra>
// kernel: tpu_custom_call.1
= control target key start
LH: loop header
LB: loop body
LE: loop exit
PB: predicated region body
PF: predicated region fallthrough
CT: control target
= control target key end

     0   :  { %7 = vsyncpa [#allocation4], 0  ;;  %s292_s0 = inlined_call_operand.hbm [shape: f32[8,128], index: 0, kind: input, shape index: {}]   ;;  %s293_s1 = inlined_call_operand.hbm [shape: f32[128,128], index: 1, kind: input, shape index: {}]   ;;  %s294_s2 = inlined_call_operand.hbm [shape: f32[8,128], index: 2, kind: output, shape index: {}]  }
   0x1   :  { %8 = vsyncpa [#allocation7], 0 }
   0x2   :  { %9 = vsyncpa [#allocation5], 0  ;;  %s15_s11 = sshll.u32 %s292_s0, 4  ;;  %s259_s12 = smov [#allocation3]   ;;  %s16_s11 = int_to_ptr.hbm [resolvable:$true] %s15_s11 }
   0x3   :  { %s17_s13 = sshll.u32 %s259_s12, 4  ;;  %s25_s16 = sshll.u32 %s293_s1, 4  ;;  %s18_s13 = int_to_ptr.vmem [resolvable:$true] %s17_s13  ;;  %s26_s16 = int_to_ptr.hbm [resolvable:$true] %s25_s16 }
   0x4   :  { %20 = dma.hbm_to_vmem [thread:$0]  %s16_s11, 128, %s18_s13, [#allocation4]  }
   0x5   :  { %s260_s17 = smov [#allocation6]   ;;  %s261_s19 = smov 128  }
   0x6   :  { %s27_s18 = sshll.u32 %s260_s17, 4  ;;  %s262_s20 = smov 8   ;;  %s28_s18 = int_to_ptr.vmem [resolvable:$true] %s27_s18 }
   0x7   :  { %33 = dma.hbm_to_vmem [thread:$0]  %s26_s16, 2048, %s28_s18, [#allocation7], %s261_s19, %s261_s19, %s262_s20  }
   0x8   :  { %253 = dma.done.wait [#allocation4], 128  }
   0x9   :  { %254 = vsyncadd [#allocation4], 4294967168 }
   0xa   :  { %255 = dma.done.wait [#allocation7], 2048  }
   0xb   :  { %256 = vsyncadd [#allocation7], 4294965248  ;;  %v64_v0 = vld [vmem:[#allocation6 + $0x78] sm:$0xff]  ;;  %v63_v1 = vld [vmem:[#allocation6 + $0x70] sm:$0xff]  ;;  %vm46_vm0 = vcmask 7168   ;;  %v263_v21 = vmov 0.0   ;;  %v107_v26 = vlaneseq }
   0xc   :  { %65 = vmatpush.xpose.msra.mxu0 %v64_v0  ;;  %v62_v2 = vld [vmem:[#allocation6 + $0x68] sm:$0xff]  ;;  %v61_v3 = vld [vmem:[#allocation6 + $0x60] sm:$0xff]  ;;  %v60_v4 = vld [vmem:[#allocation6 + $0x58] sm:$0xff]  ;;  %47 = vst.msk [vmem:[#allocation2] sm:$0xff] %vm46_vm0, %v263_v21  ;;  %s264_s0 = smov [#allocation8]   ;;  %s157_s23 = sshll.u32 %s294_s2, 4  ;;  %s158_s23 = int_to_ptr.hbm [resolvable:$true] %s157_s23 }
   0xd   :  { %v59_v5 = vld [vmem:[#allocation6 + $0x50] sm:$0xff]  ;;  %v58_v6 = vld [vmem:[#allocation6 + $0x48] sm:$0xff]  ;;  %v57_v7 = vld [vmem:[#allocation6 + $0x40] sm:$0xff]  ;;  %v108_v30 = vand.u32 127, %v107_v26  ;;  %v126_v52 = vshrl.u32 %v107_v26, 7  ;;  %s155_s1 = sshll.u32 %s264_s0, 4  ;;  %s156_s1 = int_to_ptr.vmem [resolvable:$true] %s155_s1 }
   0xe   :  { %v56_v8 = vld [vmem:[#allocation6 + $0x38] sm:$0xff]  ;;  %v55_v9 = vld [vmem:[#allocation6 + $0x30] sm:$0xff]  ;;  %v54_v10 = vld [vmem:[#allocation6 + $0x28] sm:$0xff] }
   0xf   :  { %v53_v11 = vld [vmem:[#allocation6 + $0x20] sm:$0xff]  ;;  %v52_v12 = vld [vmem:[#allocation6 + $0x18] sm:$0xff]  ;;  %v51_v13 = vld [vmem:[#allocation6 + $0x10] sm:$0xff]  ;;  %vm112_vm4 = vcmp.lt.s32.totalorder %v108_v30, 8  ;;  %vm144_vm7 = vcmp.eq.s32.totalorder %v126_v52, 0  ;;  %vm145_vm8 = vcmp.eq.s32.totalorder %v108_v30, 0 }
  0x10   :  { %66 = vmatpush.xpose.msra.mxu0 %v63_v1  ;;  %v50_v14 = vld [vmem:[#allocation6 + $0x8] sm:$0xff]  ;;  %v49_v15 = vld [vmem:[#allocation6] sm:$0xff]  ;;  %v48_v16 = vld [vmem:[#allocation3] sm:$0xff] }
  0x11   :  { %vm146_vm9 = vmand %vm144_vm7, %vm145_vm8 }
  0x13   :  { %v114_v38 = vld [vmem:[#allocation2] sm:$0xff] }
  0x14   :  { %67 = vmatpush.xpose.msra.mxu0 %v62_v2 }
  0x18   :  { %68 = vmatpush.xpose.msra.mxu0 %v61_v3 }
  0x1c   :  { %69 = vmatpush.xpose.msra.mxu0 %v60_v4 }
  0x20   :  { %70 = vmatpush.xpose.msra.mxu0 %v59_v5 }
  0x24   :  { %71 = vmatpush.xpose.msra.mxu0 %v58_v6 }
  0x28   :  { %72 = vmatpush.xpose.msra.mxu0 %v57_v7 }
  0x2c   :  { %73 = vmatpush.xpose.msra.mxu0 %v56_v8 }
  0x30   :  { %74 = vmatpush.xpose.msra.mxu0 %v55_v9 }
  0x34   :  { %75 = vmatpush.xpose.msra.mxu0 %v54_v10 }
  0x38   :  { %76 = vmatpush.xpose.msra.mxu0 %v53_v11 }
  0x3c   :  { %77 = vmatpush.xpose.msra.mxu0 %v52_v12 }
  0x40   :  { %78 = vmatpush.xpose.msra.mxu0 %v51_v13 }
  0x44   :  { %79 = vmatpush.xpose.msra.mxu0 %v50_v14 }
  0x48   :  { %80 = vmatpush.xpose.msra.mxu0 %v49_v15 }
  0x4b   :  { %81 = vmatmul.f32.vlgmr.msra.gmra.mxu0 %v48_v16 }
  0xc8   :  { %v82_v17 = vpop.f32.mrf.mxu0 }
  0xc9   :  { %v85_v18 = vmul.f32 10.0, %v82_v17 }
  0xcb   :  { %v86_v19 = vsub.f32 0.0, %v85_v18 }
  0xcd   :  { %v168_v20 = vclamps-f32 %v86_v19, 50.0 }
  0xcf   :  { %v89_v22 = vmul.f32 1.442695, %v168_v20 }
  0xd1   :  { %177 = vpow2.f32 %v89_v22 }
  0xd7   :  { %v178_v23 = vpop.eup %177 }
  0xd8   :  { %v91_v24 = vadd.f32 1.0, %v178_v23 }
  0xda   :  { %179 = vrcp.f32 %v91_v24  ;;  %v103_v29 = vand.u32 2147483648, %v91_v24  ;;  %v101_v32 = vand.u32 2147483647, %v91_v24  ;;  %vm97_vm2 = vweird.f32 %v91_v24 }
  0xdc   :  { %v104_v34 = vor.u32 1.1754944e-38, %v103_v29  ;;  %vm102_vm5 = vcmp.eq.f32.partialorder %v101_v32, 8.507059e+37 }
  0xe0   :  { %v180_v25 = vpop.eup %179 }
  0xe1   :  { %v93_v27 = vmul.f32 %v180_v25, %v91_v24  ;;  %vm98_vm1 = vweird.f32 %v180_v25 }
  0xe2   :  { %vm99_vm3 = vmor %vm97_vm2, %vm98_vm1 }
  0xe3   :  { %v94_v28 = vsub.f32 1.0, %v93_v27 }
  0xe5   :  { %v95_v31 = vmul.f32 %v180_v25, %v94_v28 }
  0xe7   :  { %v96_v33 = vadd.f32 %v180_v25, %v95_v31 }
  0xe9   :  { %v100_v35 = vsel %vm99_vm3, %v180_v25, %v96_v33 }
  0xea   :  { %v105_v36 = vsel %vm102_vm5, %v104_v34, %v100_v35 }
  0xeb   :  { %v113_v37 = vsel %vm112_vm4, %v105_v36, 0.0 }
  0xec   :  { %115 = vadd.xlane.f32.xlu0 %v113_v37 }
 0x15f   :  { %v116_v39 = vpop.xlane.xlu0 %115 }
 0x160   :  { %v117_v40 = vadd.f32 %v116_v39, %v114_v38 }
 0x162   :  { %119 = vst.msk [vmem:[#allocation2] sm:$0xff] %vm46_vm0, %v117_v40 }
 0x169   :  { %v123_v41 = vld [vmem:[#allocation2] sm:$0xff] }
 0x16a   :  { %v124_v42 = vadd.f32 1.0, %v123_v41 }
 0x16c   :  { %vm131_vm6 = vcmp.le.f32.partialorder %v124_v42, 8.0 }
 0x16d   :  { %v133_v43 = vsel %vm131_vm6, 1.0, %v263_v21 }
 0x16e   :  { %v134_v44 = vsel %vm46_vm0, %v133_v43, 0.0 }
 0x16f   :  { %135 = vadd.xlane.f32.xlu0 %v134_v44 }
 0x1e2   :  { %v136_v45 = vpop.xlane.xlu0 %135 }
 0x1e3   :  { %v137_v46 = vrot.slane %v136_v45, 4 }
 0x1e5   :  { %v138_v47 = vadd.f32 %v137_v46, %v136_v45 }
 0x1e7   :  { %v139_v48 = vrot.slane %v138_v47, 2 }
 0x1e9   :  { %v140_v49 = vadd.f32 %v139_v48, %v138_v47 }
 0x1eb   :  { %v141_v50 = vrot.slane %v140_v49, 1 }
 0x1ed   :  { %v142_v51 = vadd.f32 %v141_v50, %v140_v49 }
 0x1ef   :  { %169 = vpush %v142_v51 }
 0x220   :  { %s170_s24 = spop %169 }
 0x221   :  { %v147_v53 = vstv %s170_s24 }
 0x222   :  { %v148_v54 = vsel %vm146_vm9, %v147_v53, 0.0 }
 0x223   :  { %149 = vst [vmem:[#allocation8] sm:$0xff] %v148_v54 }
 0x224   :  { %160 = dma.vmem_to_hbm [thread:$0]  %s156_s1, 128, %s158_s23, [#allocation5]  }
 0x225   :  { %257 = dma.done.wait [#allocation5], 128  }
 0x226   :  { %258 = vsyncadd [#allocation5], 4294967168 }
 0x227   :  { %165 = vsyncpa [#allocation4], 1 }
 0x228   :  { %166 = vsyncpa [#allocation7], 1 }
 0x229   :  { %167 = vsyncpa [#allocation5], 1 }

</bundles_post_ra>
